<compile_context>
chip_gen: v6e
topology: v6e:2x2x1
jax: 0.10.0
libtpu: 0.0.40
codegen_flags: <defaults>
</compile_context>

<pallas_src>
import math

import jax
import jax.numpy as jnp
from jax.experimental import pallas as pl
from jax.experimental.pallas import tpu as pltpu


def _round_up(x, m):
    return ((x + m - 1) // m) * m


# ----------------------------- Pallas kernel --------------------------------
def _reward_model_kernel(state_ref, action_ref, w_s_ref, w_a_ref, b_ref, out_ref):
    # out = state @ Ws + action @ Wa + b   (== Linear(cat([state, action], 1)))
    acc = jnp.dot(state_ref[...], w_s_ref[...], preferred_element_type=jnp.float32)
    acc = acc + jnp.dot(action_ref[...], w_a_ref[...], preferred_element_type=jnp.float32)
    out_ref[...] = (acc + b_ref[...]).astype(out_ref.dtype)


def reward_model_forward(state_latent, action_latent, params, *, batch_tile=4096):
    """state_latent, action_latent: (B, F).

    params = (w_s, w_a, bias) built once by init_reward_model_params:
      w_s, w_a: (F, R) state/action halves of the transposed Linear weight.
      bias:     (1, R).
    """
    w_s, w_a, bias = params
    B, F = state_latent.shape
    assert action_latent.shape == (B, F)
    Fw, R = w_s.shape
    assert Fw == F and w_a.shape == (F, R) and bias.shape == (1, R)

    # Batch tile: multiple of 8, capped so the (parallel) grid has >=2 steps when
    # possible (v7x megacore sharding), and never larger than the rounded-up batch.
    tb_cap = _round_up(pl.cdiv(B, 2), 8)
    TB = max(8, min(_round_up(batch_tile, 8), tb_cap, _round_up(B, 8)))
    grid = (pl.cdiv(B, TB),)  # ragged last block; Pallas masks the OOB writeback

    cost = pl.CostEstimate(
        flops=2 * B * (2 * F) * R,
        transcendentals=0,
        bytes_accessed=4 * (2 * B * F + 2 * F * R + R + B * R),
    )

    out = pl.pallas_call(
        _reward_model_kernel,
        out_shape=jax.ShapeDtypeStruct((B, R), jnp.float32),
        grid_spec=pl.GridSpec(
            grid=grid,
            in_specs=[
                pl.BlockSpec((TB, F), lambda i: (i, 0)),  # state rows
                pl.BlockSpec((TB, F), lambda i: (i, 0)),  # action rows
                pl.BlockSpec((F, R), lambda i: (0, 0)),   # Ws (resident, DMA'd once)
                pl.BlockSpec((F, R), lambda i: (0, 0)),   # Wa (resident, DMA'd once)
                pl.BlockSpec((1, R), lambda i: (0, 0)),   # bias (resident)
            ],
            out_specs=pl.BlockSpec((TB, R), lambda i: (i, 0)),
        ),
        compiler_params=pltpu.CompilerParams(
            dimension_semantics=("parallel",),
        ),
        cost_estimate=cost,
    )(state_latent, action_latent, w_s, w_a, bias)

    return out


# ------------------------- deterministic param init -------------------------
def init_reward_model_params(key, feature_size, reward_size):
    """Matches weights_init_: xavier_uniform(gain=1) weight, zero bias.

    Returns the weight pre-transposed AND pre-split into state/action halves so the
    forward path does no per-call reshaping/padding work.
    """
    fan_in = 2 * feature_size
    fan_out = reward_size
    limit = math.sqrt(6.0 / (fan_in + fan_out))
    # PyTorch weight is (out, in); transpose once to (in, out) = (2F, R).
    w = jax.random.uniform(
        key, (fan_out, fan_in), dtype=jnp.float32, minval=-limit, maxval=limit
    )
    weight_t = jnp.transpose(w)                       # (2F, R)
    w_s = weight_t[:feature_size, :]                  # (F, R)
    w_a = weight_t[feature_size:, :]                  # (F, R)
    bias = jnp.zeros((1, reward_size), dtype=jnp.float32)
    return (w_s, w_a, bias), weight_t


# ---------------------------------- main -------------------------------------
if __name__ == "__main__":
    key = jax.random.PRNGKey(0)
    k_s, k_a, k_w = jax.random.split(key, 3)

    batch = 8
    feature_size = 32
    reward_size = 8

    state_latent = jax.random.normal(k_s, (batch, feature_size), dtype=jnp.float32)
    action_latent = jax.random.normal(k_a, (batch, feature_size), dtype=jnp.float32)

    params, weight_t = init_reward_model_params(k_w, feature_size, reward_size)

    out = reward_model_forward(state_latent, action_latent, params)
    out = jax.block_until_ready(out)

    # Reference check in plain JAX (same math as the PyTorch forward).
    x = jnp.concatenate([state_latent, action_latent], axis=1)
    ref = x @ weight_t + params[2]
    assert out.shape == (batch, reward_size)
    assert jnp.allclose(out, ref, atol=1e-5, rtol=1e-5)

    print("KERNEL_OK")
</pallas_src>

<mosaic_0001>
module attributes {stable_mosaic.version = 11 : i64} {
  func.func @_reward_model_kernel(%arg0: i32, %arg1: memref<8x32xf32, #tpu.memory_space<vmem>>, %arg2: memref<8x32xf32, #tpu.memory_space<vmem>>, %arg3: memref<32x8xf32, #tpu.memory_space<vmem>>, %arg4: memref<32x8xf32, #tpu.memory_space<vmem>>, %arg5: memref<1x8xf32, #tpu.memory_space<vmem>>, %arg6: memref<8x8xf32, #tpu.memory_space<vmem>>) attributes {dimension_semantics = [#tpu.dimension_semantics<parallel>], iteration_bounds = array<i64: 1>, scalar_prefetch = 0 : i64, scratch_operands = 0 : i64, tpu.core_type = #tpu.core_type<tc>, window_params = [{transform_indices = @transform_0, window_bounds = array<i64: 8, 32>}, {transform_indices = @transform_1, window_bounds = array<i64: 8, 32>}, {pipeline_mode = #tpu.pipeline_mode<synchronous>, transform_indices = @transform_2, window_bounds = array<i64: 32, 8>}, {pipeline_mode = #tpu.pipeline_mode<synchronous>, transform_indices = @transform_3, window_bounds = array<i64: 32, 8>}, {pipeline_mode = #tpu.pipeline_mode<synchronous>, transform_indices = @transform_4, window_bounds = array<i64: 1, 8>}, {transform_indices = @transform_5, window_bounds = array<i64: 8, 8>}]} {
    %c0 = arith.constant 0 : index
    %c0_0 = arith.constant 0 : index
    %0 = vector.load %arg1[%c0, %c0_0] : memref<8x32xf32, #tpu.memory_space<vmem>>, vector<8x32xf32>
    %c0_1 = arith.constant 0 : index
    %c0_2 = arith.constant 0 : index
    %1 = vector.load %arg3[%c0_1, %c0_2] : memref<32x8xf32, #tpu.memory_space<vmem>>, vector<32x8xf32>
    %cst = arith.constant dense<0.000000e+00> : vector<8x8xf32>
    %2 = tpu.matmul %0, %1, %cst {dimension_numbers = #tpu.dot_dimension_numbers<[1], [0], [0], [1], [0, 0, 1, 1], [], []>} : vector<8x32xf32>, vector<32x8xf32>, vector<8x8xf32> -> vector<8x8xf32>
    %c0_3 = arith.constant 0 : index
    %c0_4 = arith.constant 0 : index
    %3 = vector.load %arg2[%c0_3, %c0_4] : memref<8x32xf32, #tpu.memory_space<vmem>>, vector<8x32xf32>
    %c0_5 = arith.constant 0 : index
    %c0_6 = arith.constant 0 : index
    %4 = vector.load %arg4[%c0_5, %c0_6] : memref<32x8xf32, #tpu.memory_space<vmem>>, vector<32x8xf32>
    %cst_7 = arith.constant dense<0.000000e+00> : vector<8x8xf32>
    %5 = tpu.matmul %3, %4, %cst_7 {dimension_numbers = #tpu.dot_dimension_numbers<[1], [0], [0], [1], [0, 0, 1, 1], [], []>} : vector<8x32xf32>, vector<32x8xf32>, vector<8x8xf32> -> vector<8x8xf32>
    %6 = arith.addf %2, %5 : vector<8x8xf32>
    %c0_8 = arith.constant 0 : index
    %c0_9 = arith.constant 0 : index
    %7 = vector.load %arg5[%c0_8, %c0_9] : memref<1x8xf32, #tpu.memory_space<vmem>>, vector<1x8xf32>
    %8 = vector.broadcast %7 : vector<1x8xf32> to vector<8x8xf32>
    %9 = arith.addf %6, %8 : vector<8x8xf32>
    %c0_10 = arith.constant 0 : index
    %c0_11 = arith.constant 0 : index
    %10 = vector.load %arg6[%c0_10, %c0_11] : memref<8x8xf32, #tpu.memory_space<vmem>>, vector<8x8xf32>
    tpu.vector_store %arg6[%c0_10, %c0_11], %9 {strides = array<i32>} : memref<8x8xf32, #tpu.memory_space<vmem>>, vector<8x8xf32>,
    return
  }
  func.func @transform_0(%arg0: i32) -> (i32, i32) {
    %c0_i32 = arith.constant 0 : i32
    %c0_i32_0 = arith.constant 0 : i32
    return %arg0, %c0_i32 : i32, i32
  }
  func.func @transform_1(%arg0: i32) -> (i32, i32) {
    %c0_i32 = arith.constant 0 : i32
    %c0_i32_0 = arith.constant 0 : i32
    return %arg0, %c0_i32 : i32, i32
  }
  func.func @transform_2(%arg0: i32) -> (i32, i32) {
    %c0_i32 = arith.constant 0 : i32
    %c0_i32_0 = arith.constant 0 : i32
    %c0_i32_1 = arith.constant 0 : i32
    return %c0_i32, %c0_i32_0 : i32, i32
  }
  func.func @transform_3(%arg0: i32) -> (i32, i32) {
    %c0_i32 = arith.constant 0 : i32
    %c0_i32_0 = arith.constant 0 : i32
    %c0_i32_1 = arith.constant 0 : i32
    return %c0_i32, %c0_i32_0 : i32, i32
  }
  func.func @transform_4(%arg0: i32) -> (i32, i32) {
    %c0_i32 = arith.constant 0 : i32
    %c0_i32_0 = arith.constant 0 : i32
    %c0_i32_1 = arith.constant 0 : i32
    return %c0_i32, %c0_i32_0 : i32, i32
  }
  func.func @transform_5(%arg0: i32) -> (i32, i32) {
    %c0_i32 = arith.constant 0 : i32
    %c0_i32_0 = arith.constant 0 : i32
    return %arg0, %c0_i32 : i32, i32
  }
}

</mosaic_0001>

<bundles_post_ra>
// kernel: tpu_custom_call.1
= control target key start
LH: loop header
LB: loop body
LE: loop exit
PB: predicated region body
PF: predicated region fallthrough
CT: control target
= control target key end

     0   :  { %v262_v2 = vmov 0.0   ;;  %s331_s0 = inlined_call_operand.vmem [shape: f32[8,32], index: 0, kind: input, shape index: {}]   ;;  %s332_s1 = inlined_call_operand.vmem [shape: f32[8,32], index: 1, kind: input, shape index: {}]   ;;  %s333_s2 = inlined_call_operand.vmem [shape: f32[32,8], index: 2, kind: input, shape index: {}]   ;;  %s334_s3 = inlined_call_operand.vmem [shape: f32[32,8], index: 3, kind: input, shape index: {}]   ;;  %s335_s4 = inlined_call_operand.vmem [shape: f32[1,8], index: 4, kind: input, shape index: {}]   ;;  %s336_s5 = inlined_call_operand.hbm [shape: f32[8,8], index: 5, kind: output, shape index: {}]  }
   0x1   :  { %v30_v0 = vld [vmem:[%s334_s3 + $0x18] sm:$0xff]  ;;  %215 = vmatprep.subr.mxu0 %v262_v2  ;;  %226 = vmatprep.subr.mxu1 %v262_v2  ;;  %v29_v3 = vld [vmem:[%s334_s3 + $0x10] sm:$0xff]  ;;  %v28_v5 = vld [vmem:[%s334_s3 + $0x8] sm:$0xff] }
   0x2   :  { %v25_v1 = vld [vmem:[%s333_s2 + $0x18] sm:$0xff]  ;;  %v24_v4 = vld [vmem:[%s333_s2 + $0x10] sm:$0xff]  ;;  %216 = vmatpush3.msra.mxu0 %v30_v0  ;;  %v23_v6 = vld [vmem:[%s333_s2 + $0x8] sm:$0xff] }
   0x3   :  { %227 = vmatpush3.msra.mxu1 %v25_v1  ;;  %217 = vmatprep.subr.mxu0 %v262_v2 }
   0x4   :  { %228 = vmatprep.subr.mxu1 %v262_v2 }
   0x5   :  { %10 = vsyncpa [#allocation3], 0  ;;  %218 = vmatpush3.msra.mxu0 %v29_v3  ;;  %229 = vmatpush3.msra.mxu1 %v24_v4  ;;  %v27_v7 = vld [vmem:[%s334_s3] sm:$0xff]  ;;  %vm31_vm0 = vcmask 261120   ;;  %vm263_vm1 = vmmov 0   ;;  %s264_s13 = smov [#allocation2]  }
   0x6   :  { %219 = vmatprep.subr.mxu0 %v262_v2  ;;  %230 = vmatprep.subr.mxu1 %v262_v2  ;;  %v22_v8 = vld [vmem:[%s333_s2] sm:$0xff]  ;;  %vm186_vm2 = vcmask 64512  }
   0x7   :  { %220 = vmatpush3.msra.mxu0 %v28_v5  ;;  %231 = vmatpush3.msra.mxu1 %v23_v6  ;;  %v26_v9 = vld [vmem:[%s332_s1] sm:$0xff]  ;;  %s194_s1 = sshll.u32 %s264_s13, 4  ;;  %s195_s1 = int_to_ptr.vmem [resolvable:$true] %s194_s1 }
   0x8   :  { %221 = vmatprep.subr.mxu0 %v262_v2  ;;  %232 = vmatprep.subr.mxu1 %v262_v2  ;;  %v21_v10 = vld [vmem:[%s331_s0] sm:$0xff]  ;;  %s240_s0 = scalar_lea.vmem %s195_s1, 128  ;;  %p245_p1 = scmp.lt.s32.totalorder %s195_s1, %s195_s1 }
   0x9   :  { %222 = vmatpush3.msra.mxu0 %v27_v7  ;;  %223 = vmatprep.mubr.msk.f32.mxu0 %vm263_vm1, %v262_v2  ;;  %v204_v13 = vld [vmem:[%s335_s4] ss:$0 sm:$0xff]  ;;  %p241_p0 = scmp.ne.s32.totalorder %s195_s1, %s240_s0  ;;  %p246_p2 = scmp.lt.s32.totalorder %s240_s0, %s240_s0 }
   0xa   :  { %233 = vmatpush3.msra.mxu1 %v22_v8  ;;  %234 = vmatprep.mubr.msk.f32.mxu1 %vm263_vm1, %v262_v2 }
   0xb   :  { %224 = vmatmul.mubr.msk.f32.vlgmr.msra.gmra.mxu0 %vm31_vm0, %v26_v9  ;;  %235 = vmatmul.mubr.msk.f32.vlgmr.msra.gmra.mxu1 %vm31_vm0, %v21_v10  ;;  %p247_p3 = por %p246_p2, %p245_p1 }
   0xd   :  { %p248_p4 = pnand %p247_p3, %p241_p0 }
  0xcb   :  { %v101_v11 = vpop.f32.mrf.mxu0  ;;  %v174_v12 = vpop.f32.mrf.mxu1 }
  0xcc   :  { %v175_v14 = vadd.f32 %v174_v12, %v101_v11 }
  0xcd   :  { %v225_v15 = vpop.f32.mrf.mxu0  ;;  %v236_v16 = vpop.f32.mrf.mxu1 }
  0xce   :  { %v185_v17 = vadd.f32 %v204_v13, %v175_v14 }
  0xd0   :  { %187 = vst.msk [vmem:[#allocation2] sm:$0xff] %vm186_vm2, %v185_v17 }
  0xd1   :  { %251 = shalt.err (!%p248_p4)
}
  0xd2   :  { %197 = dma.vmem_to_hbm [thread:$0]  %s195_s1, 128, %s336_s5, [#allocation3]  }
  0xd3   :  { %260 = dma.done.wait [#allocation3], 128  }
  0xd4   :  { %261 = vsyncadd [#allocation3], 4294967168 }
  0xd5   :  { %201 = vsyncpa [#allocation3], 1 }

</bundles_post_ra>
